<compile_context>
chip_gen: v5e
topology: v5e:2x2
jax: 0.10.0
libtpu: 0.0.40
codegen_flags: <defaults>
</compile_context>

<pallas_src>
import jax
import jax.numpy as jnp
from jax.experimental import pallas as pl
from jax.experimental.pallas import tpu as pltpu


def _round_up(a, b):
    return (a + b - 1) // b * b


def _conv_stats_kernel(patches_ref, w_ref, conv_ref, sum_ref, sumsq_ref):
    """Per-M-tile channel-major conv matmul + per-tile partial batch statistics.

    patches_ref: (Kp, block_m) bf16      w_ref: (Cout8, Kp) bf16
    conv_ref:    (Cout8, block_m) f32    sum_ref / sumsq_ref: (1, Cout8, 1) f32
    """
    acc = jnp.dot(w_ref[...], patches_ref[...], preferred_element_type=jnp.float32)
    conv_ref[...] = acc
    sum_ref[...] = jnp.sum(acc, axis=1, keepdims=True)[None]
    sumsq_ref[...] = jnp.sum(acc * acc, axis=1, keepdims=True)[None]


def _bn_relu_kernel(conv_ref, scale_ref, shift_ref, out_ref):
    """Per-M-tile fused BN affine + ReLU; lane-dense stores along M.

    conv_ref: (Cout8, block_m) f32    scale_ref / shift_ref: (Cout8, 1) f32
    out_ref:  (Cout8, block_m) f32
    """
    y = conv_ref[...] * scale_ref[...] + shift_ref[...]
    out_ref[...] = jnp.maximum(y, 0.0).astype(out_ref.dtype)


def _im2col_km(x, kh, kw, stride, padding):
    """x: (N, Cin, H, W) -> patches (Cin*KH*KW, N*OH*OW), K in (Cin, KH, KW) order.

    Channel-major (K on sublanes, M on lanes) so the kernels' matmul output and stores
    are lane-dense along M with no transpose inside the kernel.
    """
    n, cin, h, w = x.shape
    xp = jnp.pad(x, ((0, 0), (0, 0), (padding, padding), (padding, padding)))
    oh = (h + 2 * padding - kh) // stride + 1
    ow = (w + 2 * padding - kw) // stride + 1
    cols = []
    for i in range(kh):
        for j in range(kw):
            cols.append(xp[:, :, i:i + stride * oh:stride, j:j + stride * ow:stride])
    # (KH*KW, N, Cin, OH, OW) -> (Cin, KH*KW, N, OH, OW) -> (K, M)
    pat = jnp.stack(cols, axis=0).transpose(2, 0, 1, 3, 4)
    return pat.reshape(cin * kh * kw, n * oh * ow), oh, ow


def partial_conv2d(x, weight, bias, gamma, beta, *, stride=1, padding=0, eps=1e-5,
                   block_m=1024):
    """Forward of PartialConv2d (Conv2d -> BatchNorm2d(train) -> ReLU).

    x:      (N, Cin, H, W)      float32, NCHW (PyTorch layout)
    weight: (Cout, Cin, KH, KW) float32
    bias:   (Cout,)  gamma: (Cout,)  beta: (Cout,)
    returns (N, Cout, OH, OW) float32

    block_m: output rows (M = N*OH*OW) processed per grid step; rounded to a multiple of
             128 (M is the lane axis).  1024 amortizes the ~0.35 us/step overhead on all
             generations; per-tile VMEM is only a few hundred KiB so v7x's 64 MiB is no
             constraint.  The clamp below keeps >= 2 tiles where possible so the
             "parallel" axis splits across v7x's two TensorCores.
    """
    del bias  # cancelled exactly by the BN batch-mean subtraction (training mode)

    n, cin, h, w = x.shape
    cout, _, kh, kw = weight.shape

    patches, oh, ow = _im2col_km(x, kh, kw, stride, padding)       # (K, M) f32
    k, m = patches.shape

    kp = _round_up(k, 16)           # bf16 packed-sublane multiple only (NOT 128)
    cout8 = _round_up(cout, 8)      # sublane multiple for the channel-major layout

    # M is the lane axis of every block -> block_m must be a multiple of 128.
    block_m = _round_up(max(128, min(block_m, _round_up(m, 128))), 128)
    if _round_up(m, block_m) // block_m < 2 and m > 128:
        block_m = _round_up((m + 1) // 2, 128)   # >= 2 tiles for v7x megacore split
    mpad = _round_up(m, block_m)
    mt = mpad // block_m

    # bf16 operands for the MXU; zero padding contributes exactly 0 to conv and stats
    # (no bias added before BN), so dividing by the true M keeps mean/var exact.
    patches_p = jnp.pad(patches.astype(jnp.bfloat16), ((0, kp - k), (0, mpad - m)))
    w_cm = jnp.pad(weight.reshape(cout, k).astype(jnp.bfloat16),
                   ((0, cout8 - cout), (0, kp - k)))

    compiler_params = pltpu.CompilerParams(dimension_semantics=("parallel",))

    # ---- Pass 1: channel-major conv matmul; stage f32 conv + per-tile stats ---------
    conv, sums, sumsqs = pl.pallas_call(
        _conv_stats_kernel,
        out_shape=(jax.ShapeDtypeStruct((cout8, mpad), jnp.float32),
                   jax.ShapeDtypeStruct((mt, cout8, 1), jnp.float32),
                   jax.ShapeDtypeStruct((mt, cout8, 1), jnp.float32)),
        grid=(mt,),
        in_specs=[
            pl.BlockSpec((kp, block_m), lambda i: (0, i)),
            pl.BlockSpec((cout8, kp), lambda i: (0, 0)),
        ],
        out_specs=(
            pl.BlockSpec((cout8, block_m), lambda i: (0, i)),
            pl.BlockSpec((1, cout8, 1), lambda i: (i, 0, 0)),
            pl.BlockSpec((1, cout8, 1), lambda i: (i, 0, 0)),
        ),
        compiler_params=compiler_params,
    )(patches_p, w_cm)

    # ---- Tiny (Cout-sized) glue: combine partial stats, build fused scale/shift -----
    sum_c = jnp.sum(sums[:, :, 0], axis=0)                  # (Cout8,) f32
    sumsq_c = jnp.sum(sumsqs[:, :, 0], axis=0)              # (Cout8,) f32
    mean = sum_c / m                                        # padded M cols contribute 0
    var = jnp.maximum(sumsq_c / m - mean * mean, 0.0)       # biased var (PyTorch BN norm)
    inv_std = jax.lax.rsqrt(var + eps)
    gamma_p = jnp.pad(gamma.astype(jnp.float32), (0, cout8 - cout))
    beta_p = jnp.pad(beta.astype(jnp.float32), (0, cout8 - cout))
    scale = (gamma_p * inv_std).reshape(cout8, 1)
    shift = (beta_p - mean * gamma_p * inv_std).reshape(cout8, 1)

    # ---- Pass 2: fused BN affine + ReLU over the staged conv (no matmul recompute) --
    out2d = pl.pallas_call(
        _bn_relu_kernel,
        out_shape=jax.ShapeDtypeStruct((cout8, mpad), jnp.float32),
        grid=(mt,),
        in_specs=[
            pl.BlockSpec((cout8, block_m), lambda i: (0, i)),
            pl.BlockSpec((cout8, 1), lambda i: (0, 0)),
            pl.BlockSpec((cout8, 1), lambda i: (0, 0)),
        ],
        out_specs=pl.BlockSpec((cout8, block_m), lambda i: (0, i)),
        compiler_params=compiler_params,
    )(conv, scale, shift)

    # Strip padding; channel-major (Cout, M) -> NCHW to match the PyTorch module layout.
    out2d = out2d[:cout, :m]
    return out2d.reshape(cout, n, oh, ow).transpose(1, 0, 2, 3)


def _reference(x, weight, bias, gamma, beta, stride, padding, eps):
    """Pure-JAX f32 reference matching PyTorch Conv2d + BatchNorm2d(train) + ReLU."""
    conv = jax.lax.conv_general_dilated(
        x, weight, window_strides=(stride, stride),
        padding=[(padding, padding), (padding, padding)],
        dimension_numbers=("NCHW", "OIHW", "NCHW"))
    conv = conv + bias.reshape(1, -1, 1, 1)
    mean = jnp.mean(conv, axis=(0, 2, 3), keepdims=True)
    var = jnp.mean((conv - mean) ** 2, axis=(0, 2, 3), keepdims=True)
    y = (conv - mean) * jax.lax.rsqrt(var + eps)
    y = y * gamma.reshape(1, -1, 1, 1) + beta.reshape(1, -1, 1, 1)
    return jnp.maximum(y, 0.0)


if __name__ == "__main__":
    # Module config: in_channels=4, out_channels=8, kernel_size=3, stride=1, padding=1
    N, CIN, H, W = 2, 4, 16, 16
    COUT, KH, KW = 8, 3, 3
    STRIDE, PAD, EPS = 1, 1, 1e-5

    key = jax.random.PRNGKey(0)
    kx, kw_, kb, kg, kbe = jax.random.split(key, 5)
    x = jax.random.normal(kx, (N, CIN, H, W), dtype=jnp.float32)
    weight = jax.random.normal(kw_, (COUT, CIN, KH, KW), dtype=jnp.float32) * 0.1
    bias = jax.random.normal(kb, (COUT,), dtype=jnp.float32) * 0.1
    gamma = 1.0 + 0.1 * jax.random.normal(kg, (COUT,), dtype=jnp.float32)
    beta = 0.1 * jax.random.normal(kbe, (COUT,), dtype=jnp.float32)

    out = partial_conv2d(x, weight, bias, gamma, beta,
                         stride=STRIDE, padding=PAD, eps=EPS, block_m=1024)
    out = jax.block_until_ready(out)

    ref = _reference(x, weight, bias, gamma, beta, STRIDE, PAD, EPS)
    assert out.shape == (N, COUT, H, W), out.shape
    # bf16 MXU operands vs f32 reference -> tolerance ~1e-2.
    assert jnp.allclose(out, ref, atol=1e-2, rtol=1e-2), float(jnp.max(jnp.abs(out - ref)))

    print("KERNEL_OK")
</pallas_src>

<mosaic_0001>
module attributes {stable_mosaic.version = 11 : i64} {
  func.func @_conv_stats_kernel(%arg0: i32, %arg1: memref<48x256xbf16, #tpu.memory_space<vmem>>, %arg2: memref<8x48xbf16, #tpu.memory_space<vmem>>, %arg3: memref<8x256xf32, #tpu.memory_space<vmem>>, %arg4: memref<1x8x1xf32, #tpu.memory_space<vmem>>, %arg5: memref<1x8x1xf32, #tpu.memory_space<vmem>>) attributes {dimension_semantics = [#tpu.dimension_semantics<parallel>], iteration_bounds = array<i64: 2>, scalar_prefetch = 0 : i64, scratch_operands = 0 : i64, tpu.core_type = #tpu.core_type<tc>, window_params = [{transform_indices = @transform_0, window_bounds = array<i64: 48, 256>}, {pipeline_mode = #tpu.pipeline_mode<synchronous>, transform_indices = @transform_1, window_bounds = array<i64: 8, 48>}, {transform_indices = @transform_2, window_bounds = array<i64: 8, 256>}, {transform_indices = @transform_3, window_bounds = array<i64: 1, 8, 1>}, {transform_indices = @transform_4, window_bounds = array<i64: 1, 8, 1>}]} {
    %c0 = arith.constant 0 : index
    %c0_0 = arith.constant 0 : index
    %0 = vector.load %arg2[%c0, %c0_0] : memref<8x48xbf16, #tpu.memory_space<vmem>>, vector<8x48xbf16>
    %c0_1 = arith.constant 0 : index
    %c0_2 = arith.constant 0 : index
    %1 = vector.load %arg1[%c0_1, %c0_2] : memref<48x256xbf16, #tpu.memory_space<vmem>>, vector<48x256xbf16>
    %cst = arith.constant dense<0.000000e+00> : vector<8x256xf32>
    %2 = tpu.matmul %0, %1, %cst {dimension_numbers = #tpu.dot_dimension_numbers<[1], [0], [0], [1], [0, 0, 1, 1], [], []>} : vector<8x48xbf16>, vector<48x256xbf16>, vector<8x256xf32> -> vector<8x256xf32>
    %c0_3 = arith.constant 0 : index
    %c0_4 = arith.constant 0 : index
    %3 = vector.load %arg3[%c0_3, %c0_4] : memref<8x256xf32, #tpu.memory_space<vmem>>, vector<8x256xf32>
    tpu.vector_store %arg3[%c0_3, %c0_4], %2 {strides = array<i32>} : memref<8x256xf32, #tpu.memory_space<vmem>>, vector<8x256xf32>,
    %cst_5 = arith.constant dense<0.000000e+00> : vector<8xf32>
    %4 = vector.multi_reduction <add>, %2, %cst_5 [1] : vector<8x256xf32> to vector<8xf32>
    %5 = vector.shape_cast %4 : vector<8xf32> to vector<8x1xf32>
    %6 = vector.shape_cast %5 : vector<8x1xf32> to vector<1x8x1xf32>
    %c0_6 = arith.constant 0 : index
    %c0_7 = arith.constant 0 : index
    %c0_8 = arith.constant 0 : index
    %7 = vector.load %arg4[%c0_6, %c0_7, %c0_8] : memref<1x8x1xf32, #tpu.memory_space<vmem>>, vector<1x8x1xf32>
    tpu.vector_store %arg4[%c0_6, %c0_7, %c0_8], %6 {strides = array<i32>} : memref<1x8x1xf32, #tpu.memory_space<vmem>>, vector<1x8x1xf32>,
    %8 = arith.mulf %2, %2 : vector<8x256xf32>
    %cst_9 = arith.constant dense<0.000000e+00> : vector<8xf32>
    %9 = vector.multi_reduction <add>, %8, %cst_9 [1] : vector<8x256xf32> to vector<8xf32>
    %10 = vector.shape_cast %9 : vector<8xf32> to vector<8x1xf32>
    %11 = vector.shape_cast %10 : vector<8x1xf32> to vector<1x8x1xf32>
    %c0_10 = arith.constant 0 : index
    %c0_11 = arith.constant 0 : index
    %c0_12 = arith.constant 0 : index
    %12 = vector.load %arg5[%c0_10, %c0_11, %c0_12] : memref<1x8x1xf32, #tpu.memory_space<vmem>>, vector<1x8x1xf32>
    tpu.vector_store %arg5[%c0_10, %c0_11, %c0_12], %11 {strides = array<i32>} : memref<1x8x1xf32, #tpu.memory_space<vmem>>, vector<1x8x1xf32>,
    return
  }
  func.func @transform_0(%arg0: i32) -> (i32, i32) {
    %c0_i32 = arith.constant 0 : i32
    %c0_i32_0 = arith.constant 0 : i32
    return %c0_i32, %arg0 : i32, i32
  }
  func.func @transform_1(%arg0: i32) -> (i32, i32) {
    %c0_i32 = arith.constant 0 : i32
    %c0_i32_0 = arith.constant 0 : i32
    %c0_i32_1 = arith.constant 0 : i32
    return %c0_i32, %c0_i32_0 : i32, i32
  }
  func.func @transform_2(%arg0: i32) -> (i32, i32) {
    %c0_i32 = arith.constant 0 : i32
    %c0_i32_0 = arith.constant 0 : i32
    return %c0_i32, %arg0 : i32, i32
  }
  func.func @transform_3(%arg0: i32) -> (i32, i32, i32) {
    %c0_i32 = arith.constant 0 : i32
    %c0_i32_0 = arith.constant 0 : i32
    %c0_i32_1 = arith.constant 0 : i32
    return %arg0, %c0_i32, %c0_i32_0 : i32, i32, i32
  }
  func.func @transform_4(%arg0: i32) -> (i32, i32, i32) {
    %c0_i32 = arith.constant 0 : i32
    %c0_i32_0 = arith.constant 0 : i32
    %c0_i32_1 = arith.constant 0 : i32
    return %arg0, %c0_i32, %c0_i32_0 : i32, i32, i32
  }
}

</mosaic_0001>

<bundles_post_ra>
// kernel: tpu_custom_call.1
= control target key start
LH: loop header
LB: loop body
LE: loop exit
PB: predicated region body
PF: predicated region fallthrough
CT: control target
= control target key end

     0   :  { %s920_s0 = inlined_call_operand.hbm [shape: bf16[48,512], index: 0, kind: input, shape index: {}]   ;;  %s921_s1 = inlined_call_operand.hbm [shape: bf16[8,48], index: 1, kind: input, shape index: {}]   ;;  %s922_s2 = inlined_call_operand.hbm [shape: f32[8,512], index: 2, kind: output, shape index: {0}]   ;;  %s923_s3 = inlined_call_operand.vmem [shape: f32[2,8,1], index: 3, kind: output, shape index: {1}]   ;;  %s924_s4 = inlined_call_operand.vmem [shape: f32[2,8,1], index: 4, kind: output, shape index: {2}]  }
   0x1   :  { %925 = sst [smem:[#allocation11_spill]] %s921_s1 }
   0x2   :  { %10 = vsyncpa [#allocation3], 0 }
   0x3   :  { %12 = vsyncpa [#allocation3 + $0x1], 0 }
   0x4   :  { %13 = vsyncpa [#allocation6], 0 }
   0x5   :  { %14 = vsyncpa [#allocation4], 0 }
   0x6   :  { %16 = vsyncpa [#allocation4 + $0x1], 0  ;;  %s769_s15 = smov 0   ;;  %s771_s16 = smov 0  }
   0x7   :  { %s773_s17 = smov 0   ;;  %s775_s18 = smov 0  }
   0x8 LB: > { %s790_s19 = sadd.s32 4294967295, %s738_s18   ;;  %s496_s20 = sadd.s32 4294967294, %s738_s18   ;;  %s738_s18 = sphi %s775_s18, %s937_s18   ;;  %s734_s17 = sphi %s773_s17, %s936_s17   ;;  %s730_s16 = sphi %s771_s16, %s935_s16   ;;  %s726_s15 = sphi %s769_s15, %s934_s15  }
   0x9   : > { %s794_s21 = sadd.s32 1, %s738_s18   ;;  %s29_s22 = sadd.s32 1, %s734_s17 }
   0xa   : > { %s26_s23 = ssub.s32 %s738_s18, %s794_s21  ;;  %p36_p0 = scmp.ne.s32.totalorder %s734_s17, %s730_s16 }
   0xb   : > { %p27_p1 = scmp.eq.s32.totalorder %s26_s23, 0  ;;  %p37_p2 = scmp.eq.s32.totalorder %s738_s18, 0 }
   0xc   : > { %p42_p3 = scmp.ne.s32.totalorder %s730_s16, %s726_s15  ;;  %p43_p4 = scmp.eq.s32.totalorder %s790_s19, 0 }
   0xd   : > { %s806_s24 = scalar_select %p27_p1, %s734_s17, %s29_s22  }
   0xe   : > { %p808_p5 = por %p37_p2, %p36_p0  ;;  %p814_p6 = por %p43_p4, %p42_p3 }
   0xf   : > { %p87_p7 = scmp.eq.s32.totalorder %s790_s19, 1  ;;  %p93_p8 = scmp.eq.s32.totalorder %s496_s20, 1 }
  0x10   : > { %p497_p9 = scmp.ge.s32.totalorder %s738_s18, 1  ;;  %p152_p10 = scmp.lt.s32.totalorder %s738_s18, 3 }
  0x11   : > { %p821_p11 = por %p87_p7, %p36_p0  ;;  %p825_p12 = por %p93_p8, %p42_p3 }
  0x12   : > { %p829_p13 = pnand %p497_p9, %p152_p10  ;;  %s931_s1 = sld [smem:[#allocation11_spill]] }
  0x13   : > { %s740_s7 = smov [#allocation5]   ;;  %p569_p3 = scmp.lt.s32.totalorder %s738_s18, 2 }
  0x14   : > { %p556_p1 = pneg %p829_p13  ;;  %s166_s8 = sshll.u32 %s740_s7, 4  ;;  %s167_s8 = int_to_ptr.vmem [resolvable:$true] %s166_s8 }
  0x15   : > { %s177_s9 = sand.u32 1, %s734_s17   ;;  %p845_p7 = pnand %p569_p3, %p808_p5 }
  0x16   : > { %p557_p2 = pnand %p556_p1, %p43_p4  ;;  %s546_s11 = smul.u32 48, %s177_s9 }
  0x17   : > { %s538_s12 = sshll.u32 %s738_s18, 3  ;;  %s178_s5 = scalar_lea.sflag [#allocation3], %s177_s9 }
  0x18   : > { %s164_s6 = sshll.u32 %s931_s1, 4  ;;  %s186_s20 = scalar_lea.hbm %s920_s0, %s538_s12  ;;  %s165_s6 = int_to_ptr.hbm [resolvable:$true] %s164_s6 }
  0x19   : > { %559 = dma.hbm_to_vmem [thread:$0]  (!%p557_p2), %s165_s6, 64, %s167_s8, [#allocation6]  }
  0x1a   : > { %s181_s22 = scalar_lea.vmem [#allocation2], %s546_s11  ;;  %s187_s30 = sshll.u32 %s186_s20, 4  ;;  %s188_s30 = int_to_ptr.hbm [resolvable:$true] %s187_s30 }
  0x1b   : > { %s189_s23 = sshll.u32 %s181_s22, 4  ;;  %s638_s7 = sshra.s32 %s188_s30, 4  ;;  %s190_s23 = int_to_ptr.vmem [resolvable:$true] %s189_s23  ;;  %s639_s7 = int_to_ptr.hbm [resolvable:$true] %s638_s7 }
  0x1c   : > { %s640_s25 = scalar_lea.hbm %s639_s7, 48  ;;  %p642_p8 = pneg %p845_p7 }
  0x1d   : > { %p641_p5 = scmp.ne.s32.totalorder %s639_s7, %s640_s25  ;;  %s645_s1 = scalar_lea.hbm %s920_s0, 96 }
  0x1e   : > { %p646_p1 = scmp.lt.s32.totalorder %s639_s7, %s920_s0  ;;  %p647_p2 = scmp.lt.s32.totalorder %s645_s1, %s640_s25 }
  0x1f   : > { %p643_p9 = pnand %p642_p8, %p641_p5 }
  0x20   : > { %p648_p3 = por %p647_p2, %p646_p1 }
  0x21   : > { %p644_p10 = pneg %p643_p9 }
  0x23   : > { %p649_p0 = pnand %p648_p3, %p644_p10 }
  0x25   : > { %652 = shalt.err (!%p649_p0)
}
  0x26   : > { %s741_s9 = smov 256   ;;  %s742_s11 = smov 128  }
  0x27   : > { %s743_s14 = smov 8   ;;  %201 = sbr.rel (%p829_p13) target bundleno = 316 (0x13c), region = 28 }
  0x28   : > { %563 = dma.hbm_to_vmem [thread:$0]  (!%p845_p7), %s188_s30, 768, %s190_s23, %s178_s5, %s741_s9, %s742_s11, %s743_s14  }
  0x29   : > { %s866_s20 = sand.u32 (!%p829_p13), 1, %s730_s16  }
  0x2a   : > { %s547_s22 = smul.u32 (!%p829_p13), 48, %s866_s20  ;;  %s204_s1 = scalar_lea.sflag (!%p829_p13), [#allocation3], %s866_s20 }
  0x2c   : > { %s207_s7 = scalar_lea.vmem [#allocation2], %s547_s22 }
  0x2d   : > { %713 = dma.done.wait (%p814_p6), %s204_s1, 768  }
  0x2e   : > { %715 = vsyncadd (%p814_p6), %s204_s1, 4294966528 }
  0x2f   : > { %717 = dma.done.wait (%p43_p4), [#allocation6], 64  }
  0x30   : > { %719 = vsyncadd (%p43_p4), [#allocation6], 4294967232  ;;  %v525_v0 = vld [vmem:[%s207_s7 + $0x20] sm:$0xf]  ;;  %v544_v1 = vld [vmem:[%s207_s7 + $0x24] sm:$0xf0] }
  0x31   : > { %v543_v2 = vld [vmem:[%s207_s7 + $0x24] sm:$0xf]  ;;  %v526_v3 = vor.u32 %v544_v1, %v525_v0  ;;  %v527_v4 = vld [vmem:[%s207_s7 + $0x28] sm:$0xf0]  ;;  %v517_v5 = vld [vmem:[%s207_s7 + $0x10] sm:$0xf] }
  0x32   : > { %v542_v6 = vld [vmem:[%s207_s7 + $0x14] sm:$0xf0]  ;;  %v530_v7 = vor.u32 %v543_v2, %v527_v4  ;;  %v541_v8 = vld [vmem:[%s207_s7 + $0x14] sm:$0xf]  ;;  %v519_v9 = vld [vmem:[%s207_s7 + $0x18] sm:$0xf0] }
  0x33   : > { %303 = vmatpush.bf16.msra.mxu0 %v526_v3  ;;  %v518_v10 = vor.u32 %v542_v6, %v517_v5  ;;  %v522_v11 = vor.u32 %v541_v8, %v519_v9  ;;  %v509_v12 = vld [vmem:[%s207_s7] sm:$0xf]  ;;  %v540_v13 = vld [vmem:[%s207_s7 + $0x4] sm:$0xf0]  ;;  %v539_v14 = vld [vmem:[%s207_s7 + $0x4] sm:$0xf] }
  0x34   : > { %316 = vmatpush.bf16.msra.mxu1 %v530_v7  ;;  %v511_v15 = vld [vmem:[%s207_s7 + $0x8] sm:$0xf0]  ;;  %v510_v16 = vor.u32 %v540_v13, %v509_v12  ;;  %v257_v18 = vld [vmem:[#allocation5] sm:$0xf]  ;;  %vm294_vm0 = vcmask 392192   ;;  %s504_s26 = sshll.u32 %s866_s20, 4 }
  0x35   : > { %v514_v17 = vor.u32 %v539_v14, %v511_v15  ;;  %s233_s29 = scalar_lea.vmem [#allocation7], %s504_s26  ;;  %s545_s23 = sshll.u32 %s790_s19, 4 }
  0x36   : > { %s359_s10 = sshll.u32 %s233_s29, 4  ;;  %s357_s25 = scalar_lea.hbm %s922_s2, %s545_s23  ;;  %s360_s10 = int_to_ptr.vmem [resolvable:$true] %s359_s10 }
  0x37   : > { %304 = vmatpush.bf16.msra.mxu0 %v518_v10  ;;  %s361_s6 = sshll.u32 %s357_s25, 4  ;;  %s338_s8 = scalar_lea.sflag [#allocation4], %s866_s20  ;;  %s362_s6 = int_to_ptr.hbm [resolvable:$true] %s361_s6 }
  0x38   : > { %317 = vmatpush.bf16.msra.mxu1 %v522_v11  ;;  %s682_s13 = sshra.s32 %s362_s6, 4  ;;  %s688_s14 = scalar_lea.hbm %s922_s2, 32  ;;  %s683_s13 = int_to_ptr.hbm [resolvable:$true] %s682_s13 }
  0x39   : > { %s684_s12 = scalar_lea.hbm %s683_s13, 16  ;;  %p689_p0 = scmp.lt.s32.totalorder %s683_s13, %s922_s2 }
  0x3a   : > { %p685_p4 = scmp.ne.s32.totalorder %s683_s13, %s684_s12  ;;  %p690_p7 = scmp.lt.s32.totalorder %s688_s14, %s684_s12 }
  0x3b   : > { %305 = vmatpush.bf16.msra.mxu0 %v510_v16 }
  0x3c   : > { %318 = vmatpush.bf16.msra.mxu1 %v514_v17  ;;  %p686_p6 = pnand %p685_p4, %p821_p11  ;;  %p691_p5 = por %p690_p7, %p689_p0 }
  0x3e   : > { %531 = vmatmul.msk.bf16.vlgmr.msra.gmra.mxu0 %vm294_vm0, %v257_v18  ;;  %p687_p13 = pneg %p686_p6 }
  0x3f   : > { %532 = vmatmul.msk.bf16.vlgmr.msra.gmra.mxu1 %vm294_vm0, %v257_v18 }
  0x40   : > { %p692_p8 = pnand %p691_p5, %p687_p13 }
  0xbb   : > { %v307_v19 = vpop.f32.mrf.mxu0 }
  0xbc   : > { %324 = vst [vmem:[%s233_s29] sm:$0xff] %v307_v19  ;;  %v320_v20 = vpop.f32.mrf.mxu1 }
  0xbd   : > { %325 = vst [vmem:[%s233_s29 + $0x8] sm:$0xff] %v320_v20  ;;  %v326_v21 = vadd.f32 %v320_v20, %v307_v19 }
  0xbe   : > { %695 = shalt.err (!%p692_p8)
}
  0xbf   : > { %554 = dma.vmem_to_hbm [thread:$0]  (%p821_p11), %s360_s10, 256, %s362_s6, %s338_s8   ;;  %327 = vadd.xlane.f32.xlu0 %v326_v21  ;;  %v331_v22 = vmul.f32 %v307_v19, %v307_v19  ;;  %v332_v23 = vmul.f32 %v320_v20, %v320_v20  ;;  %vm329_vm1 = vcmask 7168  }
  0xc0   : > { %p248_p9 = scmp.lt.s32.totalorder %s790_s19, 1 }
  0xc1   : > { %v333_v26 = vadd.f32 %v332_v23, %v331_v22 }
  0xc2   : > { %s939_s19 = smov (!%p248_p9, %s790_s19), 1 }
  0xc3   : > { %v309_v24 = vpop.f32.mrf.mxu0  ;;  %s505_s20 = sshll.u32 %s939_s19, 3 }
  0xc4   : > { %v322_v25 = vpop.f32.mrf.mxu1  ;;  %s251_s29 = scalar_lea.vmem %s923_s3, %s505_s20  ;;  %s255_s10 = scalar_lea.vmem %s924_s4, %s505_s20 }
  0xc7   : > { %334 = vadd.xlane.f32.xlu0 %v333_v26 }
 0x132   : > { %v328_v27 = vpop.xlane.xlu0 %327 }
 0x133   : > { %330 = vst.msk [vmem:[%s251_s29] sm:$0xff] %vm329_vm1, %v328_v27 }
 0x13a   : > { %v335_v28 = vpop.xlane.xlu0 %334 }
 0x13b   : > { %336 = vst.msk [vmem:[%s255_s10] sm:$0xff] %vm329_vm1, %v335_v28 }
 0x13c PF: > { %s379_s30 = sand.u32 1, %s726_s15   ;;  %p933_p11 = scmp.ge.s32.totalorder %s738_s18, 2 }
 0x13d   : > { %s380_s19 = scalar_lea.sflag [#allocation4], %s379_s30 }
 0x13e   : > { %p565_p10 = pnand %p933_p11, %p825_p12 }
 0x140   : > { %p566_p1 = pneg %p565_p10 }
 0x142   : > { %721 = dma.done.wait (%p566_p1), %s380_s19, 256  }
 0x143   : > { %723 = vsyncadd (%p566_p1), %s380_s19, 4294967040  ;;  %p19_p2 = scmp.ge.s32.totalorder %s794_s21, 4   ;;  %s934_s15 = smov %s730_s16 }
 0x144   : > { %s935_s16 = smov %s734_s17  ;;  %s936_s17 = smov %s806_s24 }
 0x145   : > { %s937_s18 = smov %s794_s21  ;;  %21 = sbr.rel (!%p19_p2) target bundleno = 8 (0x8), region = 101 }
 0x14a   :  { %400 = vsyncpa [#allocation3], 1 }
 0x14b   :  { %402 = vsyncpa [#allocation3 + $0x1], 1 }
 0x14c   :  { %403 = vsyncpa [#allocation6], 1 }
 0x14d   :  { %404 = vsyncpa [#allocation4], 1 }
 0x14e   :  { %406 = vsyncpa [#allocation4 + $0x1], 1 }

</bundles_post_ra>
